<compile_context>
chip_gen: v7x
topology: tpu7x:2x2x1
jax: 0.10.0
libtpu: 0.0.40
codegen_flags: <defaults>
</compile_context>

<pallas_src>
import functools

import jax
import jax.numpy as jnp
from jax import lax
from jax.experimental import pallas as pl
from jax.experimental.pallas import tpu as pltpu

_LANE = 128
_STREAM_TARGET_BYTES = 512 * 1024   # per-DMA-stream granularity
_MAX_STREAMS = 8                    # concurrent DMA descriptors for big copies


# ----------------------------------------------------------------------------
# Pallas kernel: pure HBM->HBM row-range copy (no VMEM, no vector ops)
# ----------------------------------------------------------------------------
def _level_slice_kernel(chunks, rows_per_level, lev_ref, table_hbm, out_hbm,
                        sem):
    """Copy the row range [(lev-1)*rows_per_level, +out_rows) of the HBM table
    straight into the HBM output, using one concurrent DMA per static chunk.

    chunks        : static tuple of (dst_row_start, n_rows)
    rows_per_level: static rows of the table belonging to one level
    lev_ref       : SMEM (1,) int32, 1-based level (scalar prefetch)
    table_hbm     : (total_rows, cols) raw HBM ref (no auto-DMA)
    out_hbm       : (out_rows, cols) raw HBM ref (output, no auto-DMA)
    sem           : DMA semaphores, one per chunk
    """
    base = (lev_ref[0] - 1) * rows_per_level
    copies = []
    for idx, (dst0, nrows) in enumerate(chunks):
        src0 = base + dst0
        if rows_per_level % 8 == 0 and dst0 % 8 == 0:
            # Source row start is provably sublane-aligned -> aligned DMA.
            src0 = pl.multiple_of(src0, 8)
        cp = pltpu.make_async_copy(
            table_hbm.at[pl.ds(src0, nrows), :],
            out_hbm.at[pl.ds(dst0, nrows), :],
            sem.at[idx],
        )
        cp.start()
        copies.append(cp)
    for cp in copies:
        cp.wait()


# ----------------------------------------------------------------------------
# Parameter construction (deterministic, mirrors __init__; plain-JAX glue)
# ----------------------------------------------------------------------------
def make_level_encoding_params(n_patches, hidden_dim, lev_encoding, num_levels,
                               key=None):
    if lev_encoding == "static":
        # pe[j-1, i-1, k-1] with 1-based i, j, k as in the PyTorch loops:
        #   k even: sin(i / 10000**(2k/H)) + sin(j / 10000**(2k/H))
        #   k odd : cos(i / 10000**(2k/H)) + cos(j / 10000**(2k/H))
        i = jnp.arange(1, n_patches + 1, dtype=jnp.float32)[None, :, None]
        k = jnp.arange(1, hidden_dim + 1, dtype=jnp.float32)[None, None, :]
        j = jnp.arange(1, num_levels + 1, dtype=jnp.float32)[:, None, None]
        div = jnp.power(jnp.float32(10000.0), 2.0 * k / jnp.float32(hidden_dim))
        even = (jnp.arange(1, hidden_dim + 1) % 2 == 0)[None, None, :]
        level_embed = jnp.where(
            even,
            jnp.sin(i / div) + jnp.sin(j / div),
            jnp.cos(i / div) + jnp.cos(j / div)).astype(jnp.float32)
        # (num_levels, n_patches, hidden); the original (L,1,P,H) singleton is
        # restored on output.
        table_rows = level_embed.reshape(num_levels * n_patches, hidden_dim)
        params = {"level_embed": level_embed, "table_rows": table_rows}
    else:
        # nn.Embedding(num_levels * n_patches, hidden_dim), default init N(0,1)
        if key is None:
            key = jax.random.PRNGKey(0)
        weight = jax.random.normal(
            key, (num_levels * n_patches, hidden_dim), dtype=jnp.float32)
        params = {"embedding_weight": weight, "table_rows": weight}

    # Lane-dense flat view, built once here (not per forward call) so the
    # kernel's DMA is fully contiguous when H is not a multiple of 128.
    if (n_patches * hidden_dim) % _LANE == 0:
        params["table_flat"] = params["table_rows"].reshape(
            num_levels * n_patches * hidden_dim // _LANE, _LANE)
    return params


# ----------------------------------------------------------------------------
# Forward wrapper
# ----------------------------------------------------------------------------
def _chunk_rows(total_rows, row_bytes):
    """Split the output rows into up to _MAX_STREAMS concurrent DMA chunks,
    keeping chunk starts sublane-aligned (multiple of 8) when possible."""
    total_bytes = total_rows * row_bytes
    n = max(1, min(_MAX_STREAMS, -(-total_bytes // _STREAM_TARGET_BYTES)))
    per = -(-total_rows // n)
    if total_rows >= 8:
        per = ((per + 7) // 8) * 8
    chunks = []
    start = 0
    while start < total_rows:
        size = min(per, total_rows - start)
        chunks.append((start, size))
        start += size
    return tuple(chunks)


def level_encoding_forward(x, lev, params, *, lev_encoding, n_patches,
                           hidden_dim, num_levels, small_bypass_bytes=0):
    """Returns (1, S, hidden_dim), S = x.shape[1]."""
    del lev_encoding  # both branches share the same table-slice kernel
    S = x.shape[1]
    if S > n_patches:
        raise ValueError(f"x.shape[1]={S} exceeds n_patches={n_patches}")
    if isinstance(lev, int) and not (1 <= lev <= num_levels):
        raise ValueError(f"lev={lev} must be in [1, {num_levels}]")
    # Clamp so a (traced) bad level can never drive the DMA out of bounds.
    lev_arr = jnp.clip(jnp.asarray([lev], dtype=jnp.int32), 1, num_levels)

    table_rows = params["table_rows"]           # (num_levels*n_patches, H)
    table_flat = params.get("table_flat")       # (L*P*H/128, 128) or None
    itemsize = jnp.dtype(table_rows.dtype).itemsize
    out_bytes = S * hidden_dim * itemsize

    # Small-size bypass: fixed pallas_call + DMA-setup overhead dwarfs a
    # sub-microsecond copy.  Disabled by default so the kernel path is used.
    if small_bypass_bytes and out_bytes <= small_bypass_bytes:
        start = (lev_arr[0] - 1) * n_patches
        out = lax.dynamic_slice(table_rows, (start, 0), (S, hidden_dim))
        return out[None]

    # Prefer the lane-dense flat layout when H is not 128-aligned but the
    # sliced element range is (source/dest stay contiguous, no padded lanes).
    use_flat = (table_flat is not None
                and hidden_dim % _LANE != 0
                and (S * hidden_dim) % _LANE == 0)
    if use_flat:
        table = table_flat
        rows_per_level = (n_patches * hidden_dim) // _LANE
        out_rows, out_cols = (S * hidden_dim) // _LANE, _LANE
    else:
        table = table_rows
        rows_per_level = n_patches
        out_rows, out_cols = S, hidden_dim

    chunks = _chunk_rows(out_rows, out_cols * itemsize)
    kernel = functools.partial(_level_slice_kernel, chunks, rows_per_level)

    out = pl.pallas_call(
        kernel,
        out_shape=jax.ShapeDtypeStruct((out_rows, out_cols), table.dtype),
        grid_spec=pltpu.PrefetchScalarGridSpec(
            num_scalar_prefetch=1,
            grid=(1,),
            in_specs=[
                # Table stays in HBM; the kernel DMAs only the rows it needs.
                pl.BlockSpec(memory_space=pl.ANY),
            ],
            # Output stays in HBM too: the DMA writes it directly (no VMEM
            # staging, no double-buffer, no auto-pipeline write-back).
            out_specs=pl.BlockSpec(memory_space=pl.ANY),
            scratch_shapes=[pltpu.SemaphoreType.DMA((len(chunks),))],
        ),
    )(lev_arr, table)
    return out.reshape(1, S, hidden_dim)


# ----------------------------------------------------------------------------
# Demo / check
# ----------------------------------------------------------------------------
if __name__ == "__main__":
    key = jax.random.PRNGKey(0)
    k_x, k_emb, k_emb2 = jax.random.split(key, 3)

    # Small shapes consistent with the module.
    batch, seq, hidden_dim = 2, 8, 32
    n_patches, num_levels = 16, 4

    x = jax.random.normal(k_x, (batch, seq, hidden_dim), dtype=jnp.float32)

    p_static = make_level_encoding_params(n_patches, hidden_dim, "static",
                                          num_levels)
    p_learn = make_level_encoding_params(n_patches, hidden_dim, "learned",
                                         num_levels, key=k_emb)

    for lev in (1, 2, num_levels):
        # --- static branch (lane-dense flat path: 8*32 % 128 == 0) ---
        out_static = jax.block_until_ready(level_encoding_forward(
            x, lev, p_static, lev_encoding="static", n_patches=n_patches,
            hidden_dim=hidden_dim, num_levels=num_levels))
        ref_static = p_static["level_embed"][lev - 1][None, :seq, :]
        assert out_static.shape == (1, seq, hidden_dim)
        assert jnp.allclose(out_static, ref_static)

        # --- learned (embedding) branch ---
        out_learn = jax.block_until_ready(level_encoding_forward(
            x, lev, p_learn, lev_encoding="learned", n_patches=n_patches,
            hidden_dim=hidden_dim, num_levels=num_levels))
        start = (lev - 1) * n_patches
        ref_learn = p_learn["embedding_weight"][start:start + seq][None]
        assert out_learn.shape == (1, seq, hidden_dim)
        assert jnp.allclose(out_learn, ref_learn)

    # --- rows-layout fallback path (S*H % 128 != 0): hidden_dim = 40 ---
    hidden2 = 40
    x2 = jax.random.normal(k_x, (batch, seq, hidden2), dtype=jnp.float32)
    p2 = make_level_encoding_params(n_patches, hidden2, "learned", num_levels,
                                    key=k_emb2)
    out2 = jax.block_until_ready(level_encoding_forward(
        x2, 3, p2, lev_encoding="learned", n_patches=n_patches,
        hidden_dim=hidden2, num_levels=num_levels))
    ref2 = p2["embedding_weight"][2 * n_patches:2 * n_patches + seq][None]
    assert out2.shape == (1, seq, hidden2)
    assert jnp.allclose(out2, ref2)

    # --- small-size bypass path (plain JAX, no pallas_call) ---
    out_b = jax.block_until_ready(level_encoding_forward(
        x, 2, p_learn, lev_encoding="learned", n_patches=n_patches,
        hidden_dim=hidden_dim, num_levels=num_levels,
        small_bypass_bytes=1 << 20))
    ref_b = p_learn["embedding_weight"][n_patches:n_patches + seq][None]
    assert jnp.allclose(out_b, ref_b)

    print("KERNEL_OK")
</pallas_src>

<mosaic_0001>
module attributes {stable_mosaic.version = 11 : i64} {
  func.func @_level_slice_kernel(%arg0: i32, %arg1: memref<1xi32, #tpu.memory_space<smem>>, %arg2: memref<16x128xf32, #tpu.memory_space<any>>, %arg3: memref<2x128xf32, #tpu.memory_space<any>>, %arg4: memref<1x!tpu.dma_semaphore, #tpu.memory_space<semaphore_mem>>) attributes {dimension_semantics = [#tpu.dimension_semantics<arbitrary>], iteration_bounds = array<i64: 1>, scalar_prefetch = 1 : i64, scratch_operands = 1 : i64, tpu.core_type = #tpu.core_type<tc>, window_params = [{}, {}]} {
    %c0 = arith.constant 0 : index
    %0 = memref.load %arg1[%c0] : memref<1xi32, #tpu.memory_space<smem>>
    %c1_i32 = arith.constant 1 : i32
    %1 = arith.subi %0, %c1_i32 : i32
    %c4_i32 = arith.constant 4 : i32
    %2 = arith.muli %1, %c4_i32 : i32
    %c0_i32 = arith.constant 0 : i32
    %3 = arith.addi %2, %c0_i32 : i32
    %c0_i32_0 = arith.constant 0 : i32
    %c0_i32_1 = arith.constant 0 : i32
    %4 = tpu.memref_slice %arg2[%3, %c0_i32_1] : memref<16x128xf32, #tpu.memory_space<any>> -> memref<2x128xf32, #tpu.memory_space<any>>
    %c0_i32_2 = arith.constant 0 : i32
    %c0_i32_3 = arith.constant 0 : i32
    %5 = tpu.memref_slice %arg3[%c0_i32_2, %c0_i32_3] : memref<2x128xf32, #tpu.memory_space<any>> -> memref<2x128xf32, #tpu.memory_space<any>>
    %6 = tpu.memref_slice %arg4[%c0_i32_0] : memref<1x!tpu.dma_semaphore, #tpu.memory_space<semaphore_mem>> -> memref<1x!tpu.dma_semaphore, #tpu.memory_space<semaphore_mem>>
    %7 = tpu.memref_squeeze %6 : memref<1x!tpu.dma_semaphore, #tpu.memory_space<semaphore_mem>> -> memref<!tpu.dma_semaphore, #tpu.memory_space<semaphore_mem>>
    tpu.enqueue_dma source(%4 : memref<2x128xf32, #tpu.memory_space<any>>) target(%5 : memref<2x128xf32, #tpu.memory_space<any>>) target_semaphore(%7 : memref<!tpu.dma_semaphore, #tpu.memory_space<semaphore_mem>>)
    %c0_i32_4 = arith.constant 0 : i32
    %c0_i32_5 = arith.constant 0 : i32
    %8 = tpu.memref_slice %arg2[%3, %c0_i32_5] : memref<16x128xf32, #tpu.memory_space<any>> -> memref<2x128xf32, #tpu.memory_space<any>>
    %c0_i32_6 = arith.constant 0 : i32
    %c0_i32_7 = arith.constant 0 : i32
    %9 = tpu.memref_slice %arg3[%c0_i32_6, %c0_i32_7] : memref<2x128xf32, #tpu.memory_space<any>> -> memref<2x128xf32, #tpu.memory_space<any>>
    %10 = tpu.memref_slice %arg4[%c0_i32_4] : memref<1x!tpu.dma_semaphore, #tpu.memory_space<semaphore_mem>> -> memref<1x!tpu.dma_semaphore, #tpu.memory_space<semaphore_mem>>
    %11 = tpu.memref_squeeze %10 : memref<1x!tpu.dma_semaphore, #tpu.memory_space<semaphore_mem>> -> memref<!tpu.dma_semaphore, #tpu.memory_space<semaphore_mem>>
    tpu.wait_dma2 semaphore(%11 : memref<!tpu.dma_semaphore, #tpu.memory_space<semaphore_mem>>) src(%8 : memref<2x128xf32, #tpu.memory_space<any>>) dst(%9 : memref<2x128xf32, #tpu.memory_space<any>>)
    return
  }
}

</mosaic_0001>

<bundles_post_ra>
// kernel: tpu_custom_call.1
= control target key start
LH: loop header
LB: loop body
LE: loop exit
PB: predicated region body
PF: predicated region fallthrough
CT: control target
= control target key end

     0   :  { %s47_s16 = smov [#allocation2]   ;;  %s48_s17 = smov [#allocation5]   ;;  %s74_s0 = inlined_call_operand.<no memory space> [shape: s32[1], index: 0, kind: input, shape index: {}]   ;;  %s75_s1 = inlined_call_operand.hbm [shape: f32[16,128], index: 1, kind: input, shape index: {}]   ;;  %s76_s2 = inlined_call_operand.hbm [shape: f32[2,128], index: 2, kind: output, shape index: {}]  }
   0x1   :  { %s37_s11 = sadd.s32 4294967295, %s74_s0  ;;  %s49_s18 = smov 0  }
   0x2   :  { %s41_s12 = sshll.u32 %s37_s11, 6 }
   0x3   :  { %s12_s15 = scalar_lea.hbm %s75_s1, %s41_s12 }
   0x4   :  { %25 = dma.general %s12_s15, 32, %s76_s2, %s47_s16, %s48_s17, [#allocation6], %s49_s18, 0  }
   0x5   :  { %45 = dma.done.wait [#allocation2], 32 }
   0x6   :  { %46 = vsyncadd [#allocation2], 4294967264 }
   0x7   :  { %29 = vsyncmov [#allocation2] }
   0xa   :  { %s30_s21 = vpop.sfrf %29 }
   0xb   :  { %p40_p0 = scmp.ne.s32.totalorder %s30_s21, 0 }
   0xd   :  { %34 = shalt.err (%p40_p0)  }

</bundles_post_ra>
